<compile_context>
chip_gen: v7x
topology: tpu7x:2x2x1
jax: 0.10.0
libtpu: 0.0.40
codegen_flags: <defaults>
</compile_context>

<pallas_src>
import jax
import jax.numpy as jnp
from jax.experimental import pallas as pl
from jax.experimental.pallas import tpu as pltpu


def _complexnet_fused_kernel(x_ref,
                             w1_ref, b1_ref,
                             w2_ref, b2_ref,
                             w3_ref, b3_ref,
                             w4_ref, b4_ref,
                             out_ref):
    """fc1 -> ht -> fc2 -> ht -> fc3 -> ht -> fc4, all in VMEM/vregs."""
    h = x_ref[...]                                   # (B, 2*In), f32
    layers = ((w1_ref, b1_ref), (w2_ref, b2_ref),
              (w3_ref, b3_ref), (w4_ref, b4_ref))
    n = len(layers)
    for idx, (w_ref, b_ref) in enumerate(layers):
        # One MXU matmul per complex layer (block-matrix formulation),
        # f32 accumulation, single VPU broadcast-add for the fused bias.
        h = jnp.dot(h, w_ref[...],
                    preferred_element_type=jnp.float32) + b_ref[...]
        if idx < n - 1:
            # complex_hardtanh: clamp real & imag parts independently; on the
            # packed [real | imag] layout that is a plain elementwise clip.
            h = jnp.clip(h, -1.0, 1.0)
    out_ref[...] = h.astype(out_ref.dtype)


def pack_complex_layer(wr, wi, br, bi):
    """Pack complex weights (in,out) + biases (1,out) into real block form."""
    w_cat = jnp.concatenate(
        [jnp.concatenate([wr, wi], axis=1),
         jnp.concatenate([-wi, wr], axis=1)], axis=0)          # (2*in, 2*out)
    b_cat = jnp.concatenate([br, bi], axis=1)                  # (1, 2*out)
    return w_cat, b_cat


def complexnet_forward(packed_params, xr, xi):
    """Run the fused ComplexNet kernel.

    packed_params: list of 4 (w_cat, b_cat) tuples (block-matrix form).
    xr, xi: (B, input_size) float32 real / imag parts of the input.
    Returns (yr, yi) with shape (B, input_size).
    """
    B, Fin = xr.shape
    x_cat = jnp.concatenate([xr, xi], axis=1)                  # (B, 2*Fin)

    # Flatten params into the pallas_call argument list.
    flat_args = []
    in_specs = [pl.BlockSpec(x_cat.shape, lambda: (0, 0))]
    for (w_cat, b_cat) in packed_params:
        flat_args.extend([w_cat, b_cat])
        in_specs.append(pl.BlockSpec(w_cat.shape, lambda: (0, 0)))
        in_specs.append(pl.BlockSpec(b_cat.shape, lambda: (0, 0)))

    out_cols = packed_params[-1][0].shape[1]                   # 2 * input_size
    out_shape = jax.ShapeDtypeStruct((B, out_cols), jnp.float32)

    y_cat = pl.pallas_call(
        _complexnet_fused_kernel,
        out_shape=out_shape,
        grid=(),                                               # single launch
        in_specs=in_specs,
        out_specs=pl.BlockSpec((B, out_cols), lambda: (0, 0)),
    )(x_cat, *flat_args)

    Fout = out_cols // 2
    return y_cat[:, :Fout], y_cat[:, Fout:]


def init_complex_linear(key, in_features, out_features):
    """Deterministic synthetic init; weights stored transposed (in, out)."""
    k1, k2, k3, k4 = jax.random.split(key, 4)
    scale = 1.0 / jnp.sqrt(jnp.float32(in_features))
    wr = jax.random.uniform(k1, (in_features, out_features), jnp.float32,
                            -scale, scale)
    wi = jax.random.uniform(k2, (in_features, out_features), jnp.float32,
                            -scale, scale)
    br = jax.random.uniform(k3, (1, out_features), jnp.float32, -scale, scale)
    bi = jax.random.uniform(k4, (1, out_features), jnp.float32, -scale, scale)
    return wr, wi, br, bi


def make_complexnet_params(key, input_size, hidden_size):
    mid = int(input_size * 1.3)
    dims = [(input_size, mid), (mid, hidden_size),
            (hidden_size, mid), (mid, input_size)]
    keys = jax.random.split(key, len(dims))
    return [init_complex_linear(k, i, o) for k, (i, o) in zip(keys, dims)]


if __name__ == "__main__":
    input_size = 16       # -> int(16 * 1.3) == 20
    hidden_size = 32
    batch = 8

    key = jax.random.PRNGKey(0)
    kx, kp = jax.random.split(key)
    kxr, kxi = jax.random.split(kx)

    # complex64 input x = xr + i*xi, shape (batch, input_size)
    xr = jax.random.normal(kxr, (batch, input_size), jnp.float32)
    xi = jax.random.normal(kxi, (batch, input_size), jnp.float32)

    raw_params = make_complexnet_params(kp, input_size, hidden_size)
    packed_params = [pack_complex_layer(*p) for p in raw_params]

    yr, yi = complexnet_forward(packed_params, xr, xi)
    jax.block_until_ready((yr, yi))

    # Reference check in plain JAX complex arithmetic (same semantics).
    def ref_forward(params, xr, xi):
        x = xr + 1j * xi
        n = len(params)
        for idx, (wr, wi, br, bi) in enumerate(params):
            w = (wr + 1j * wi).astype(jnp.complex64)
            b = (br + 1j * bi).astype(jnp.complex64)
            x = x @ w + b
            if idx < n - 1:
                x = (jnp.clip(x.real, -1.0, 1.0)
                     + 1j * jnp.clip(x.imag, -1.0, 1.0)).astype(jnp.complex64)
        return x

    y_ref = ref_forward(raw_params, xr, xi)
    assert jnp.allclose(yr, y_ref.real, atol=1e-4, rtol=1e-4)
    assert jnp.allclose(yi, y_ref.imag, atol=1e-4, rtol=1e-4)

    print("KERNEL_OK")
</pallas_src>

<mosaic_0001>
module attributes {stable_mosaic.version = 11 : i64} {
  func.func @_complexnet_fused_kernel(%arg0: memref<8x32xf32, #tpu.memory_space<vmem>>, %arg1: memref<32x40xf32, #tpu.memory_space<vmem>>, %arg2: memref<1x40xf32, #tpu.memory_space<vmem>>, %arg3: memref<40x64xf32, #tpu.memory_space<vmem>>, %arg4: memref<1x64xf32, #tpu.memory_space<vmem>>, %arg5: memref<64x40xf32, #tpu.memory_space<vmem>>, %arg6: memref<1x40xf32, #tpu.memory_space<vmem>>, %arg7: memref<40x32xf32, #tpu.memory_space<vmem>>, %arg8: memref<1x32xf32, #tpu.memory_space<vmem>>, %arg9: memref<8x32xf32, #tpu.memory_space<vmem>>) attributes {dimension_semantics = [], scalar_prefetch = 0 : i64, scratch_operands = 0 : i64, tpu.core_type = #tpu.core_type<tc>} {
    %c0 = arith.constant 0 : index
    %c0_0 = arith.constant 0 : index
    %0 = vector.load %arg0[%c0, %c0_0] : memref<8x32xf32, #tpu.memory_space<vmem>>, vector<8x32xf32>
    %c0_1 = arith.constant 0 : index
    %c0_2 = arith.constant 0 : index
    %1 = vector.load %arg1[%c0_1, %c0_2] : memref<32x40xf32, #tpu.memory_space<vmem>>, vector<32x40xf32>
    %cst = arith.constant dense<0.000000e+00> : vector<8x40xf32>
    %2 = tpu.matmul %0, %1, %cst {dimension_numbers = #tpu.dot_dimension_numbers<[1], [0], [0], [1], [0, 0, 1, 1], [], []>} : vector<8x32xf32>, vector<32x40xf32>, vector<8x40xf32> -> vector<8x40xf32>
    %c0_3 = arith.constant 0 : index
    %c0_4 = arith.constant 0 : index
    %3 = vector.load %arg2[%c0_3, %c0_4] : memref<1x40xf32, #tpu.memory_space<vmem>>, vector<1x40xf32>
    %4 = vector.broadcast %3 : vector<1x40xf32> to vector<8x40xf32>
    %5 = arith.addf %2, %4 : vector<8x40xf32>
    %cst_5 = arith.constant -1.000000e+00 : f32
    %cst_6 = arith.constant 1.000000e+00 : f32
    %6 = vector.broadcast %cst_5 : f32 to vector<8x40xf32>
    %7 = arith.maximumf %6, %5 : vector<8x40xf32>
    %8 = vector.broadcast %cst_6 : f32 to vector<8x40xf32>
    %9 = arith.minimumf %8, %7 : vector<8x40xf32>
    %c0_7 = arith.constant 0 : index
    %c0_8 = arith.constant 0 : index
    %10 = vector.load %arg3[%c0_7, %c0_8] : memref<40x64xf32, #tpu.memory_space<vmem>>, vector<40x64xf32>
    %cst_9 = arith.constant dense<0.000000e+00> : vector<8x64xf32>
    %11 = tpu.matmul %9, %10, %cst_9 {dimension_numbers = #tpu.dot_dimension_numbers<[1], [0], [0], [1], [0, 0, 1, 1], [], []>} : vector<8x40xf32>, vector<40x64xf32>, vector<8x64xf32> -> vector<8x64xf32>
    %c0_10 = arith.constant 0 : index
    %c0_11 = arith.constant 0 : index
    %12 = vector.load %arg4[%c0_10, %c0_11] : memref<1x64xf32, #tpu.memory_space<vmem>>, vector<1x64xf32>
    %13 = vector.broadcast %12 : vector<1x64xf32> to vector<8x64xf32>
    %14 = arith.addf %11, %13 : vector<8x64xf32>
    %cst_12 = arith.constant -1.000000e+00 : f32
    %cst_13 = arith.constant 1.000000e+00 : f32
    %15 = vector.broadcast %cst_12 : f32 to vector<8x64xf32>
    %16 = arith.maximumf %15, %14 : vector<8x64xf32>
    %17 = vector.broadcast %cst_13 : f32 to vector<8x64xf32>
    %18 = arith.minimumf %17, %16 : vector<8x64xf32>
    %c0_14 = arith.constant 0 : index
    %c0_15 = arith.constant 0 : index
    %19 = vector.load %arg5[%c0_14, %c0_15] : memref<64x40xf32, #tpu.memory_space<vmem>>, vector<64x40xf32>
    %cst_16 = arith.constant dense<0.000000e+00> : vector<8x40xf32>
    %20 = tpu.matmul %18, %19, %cst_16 {dimension_numbers = #tpu.dot_dimension_numbers<[1], [0], [0], [1], [0, 0, 1, 1], [], []>} : vector<8x64xf32>, vector<64x40xf32>, vector<8x40xf32> -> vector<8x40xf32>
    %c0_17 = arith.constant 0 : index
    %c0_18 = arith.constant 0 : index
    %21 = vector.load %arg6[%c0_17, %c0_18] : memref<1x40xf32, #tpu.memory_space<vmem>>, vector<1x40xf32>
    %22 = vector.broadcast %21 : vector<1x40xf32> to vector<8x40xf32>
    %23 = arith.addf %20, %22 : vector<8x40xf32>
    %cst_19 = arith.constant -1.000000e+00 : f32
    %cst_20 = arith.constant 1.000000e+00 : f32
    %24 = vector.broadcast %cst_19 : f32 to vector<8x40xf32>
    %25 = arith.maximumf %24, %23 : vector<8x40xf32>
    %26 = vector.broadcast %cst_20 : f32 to vector<8x40xf32>
    %27 = arith.minimumf %26, %25 : vector<8x40xf32>
    %c0_21 = arith.constant 0 : index
    %c0_22 = arith.constant 0 : index
    %28 = vector.load %arg7[%c0_21, %c0_22] : memref<40x32xf32, #tpu.memory_space<vmem>>, vector<40x32xf32>
    %cst_23 = arith.constant dense<0.000000e+00> : vector<8x32xf32>
    %29 = tpu.matmul %27, %28, %cst_23 {dimension_numbers = #tpu.dot_dimension_numbers<[1], [0], [0], [1], [0, 0, 1, 1], [], []>} : vector<8x40xf32>, vector<40x32xf32>, vector<8x32xf32> -> vector<8x32xf32>
    %c0_24 = arith.constant 0 : index
    %c0_25 = arith.constant 0 : index
    %30 = vector.load %arg8[%c0_24, %c0_25] : memref<1x32xf32, #tpu.memory_space<vmem>>, vector<1x32xf32>
    %31 = vector.broadcast %30 : vector<1x32xf32> to vector<8x32xf32>
    %32 = arith.addf %29, %31 : vector<8x32xf32>
    %c0_26 = arith.constant 0 : index
    %c0_27 = arith.constant 0 : index
    %33 = vector.load %arg9[%c0_26, %c0_27] : memref<8x32xf32, #tpu.memory_space<vmem>>, vector<8x32xf32>
    tpu.vector_store %arg9[%c0_26, %c0_27], %32 {strides = array<i32>} : memref<8x32xf32, #tpu.memory_space<vmem>>, vector<8x32xf32>,
    return
  }
}

</mosaic_0001>

<bundles_post_ra>
// kernel: tpu_custom_call.1
= control target key start
LH: loop header
LB: loop body
LE: loop exit
PB: predicated region body
PF: predicated region fallthrough
CT: control target
= control target key end

     0   :  { %v551_v3 = vmov 0.0|0.0   ;;  %vm552_vm0 = vmmov 0   ;;  %v553_v6 = vmov 0.0   ;;  %s712_s0 = inlined_call_operand.vmem [shape: f32[8,32], index: 0, kind: input, shape index: {}]   ;;  %s713_s1 = inlined_call_operand.vmem [shape: f32[32,40], index: 1, kind: input, shape index: {}]   ;;  %s714_s2 = inlined_call_operand.vmem [shape: f32[1,40], index: 2, kind: input, shape index: {}]   ;;  %s715_s3 = inlined_call_operand.vmem [shape: f32[40,64], index: 3, kind: input, shape index: {}]   ;;  %s716_s4 = inlined_call_operand.vmem [shape: f32[1,64], index: 4, kind: input, shape index: {}]   ;;  %s717_s5 = inlined_call_operand.vmem [shape: f32[64,40], index: 5, kind: input, shape index: {}]   ;;  %s718_s6 = inlined_call_operand.vmem [shape: f32[1,40], index: 6, kind: input, shape index: {}]   ;;  %s719_s7 = inlined_call_operand.vmem [shape: f32[40,32], index: 7, kind: input, shape index: {}]   ;;  %s720_s8 = inlined_call_operand.vmem [shape: f32[1,32], index: 8, kind: input, shape index: {}]   ;;  %s721_s9 = inlined_call_operand.hbm [shape: f32[8,32], index: 9, kind: output, shape index: {}]  }
   0x1   :  { %v34_v0 = vld [vmem:[%s713_s1] sm:$0xff]  ;;  %v35_v1 = vld [vmem:[%s713_s1 + $0x8] sm:$0xff]  ;;  %v36_v2 = vld [vmem:[%s713_s1 + $0x10] sm:$0xff]  ;;  %493 = vmatprep.subr.bf16.mxu0 %v551_v3  ;;  %445 = vmatprep.mubr.msk.f32.mxu0 %vm552_vm0, %v553_v6 }
   0x2   :  { %v494_v4 = vpack.c.bf16 %v35_v1, %v34_v0  ;;  %v37_v5 = vld [vmem:[%s713_s1 + $0x18] sm:$0xff]  ;;  %v121_v7 = vld [vmem:[%s715_s3] sm:$0xff]  ;;  %499 = vmatprep.subr.bf16.mxu1 %v551_v3  ;;  %v122_v8 = vld [vmem:[%s715_s3 + $0x8] sm:$0xff]  ;;  %458 = vmatprep.mubr.msk.f32.mxu1 %vm552_vm0, %v553_v6 }
   0x3   :  { %14 = vsyncpa [#allocation3], 0  ;;  %v497_v9 = vpack.c.bf16 %v37_v5, %v36_v2  ;;  %v500_v10 = vpack.c.bf16 %v122_v8, %v121_v7  ;;  %v33_v11 = vld [vmem:[%s712_s0] sm:$0xff]  ;;  %vm45_vm1 = vcmask 261120   ;;  %v123_v12 = vld [vmem:[%s715_s3 + $0x10] sm:$0xff]  ;;  %vm133_vm2 = vcmask 326656  }
   0x4   :  { %495 = vmatpush3.bf16.msra.mxu0 %v494_v4  ;;  %v124_v13 = vld [vmem:[%s715_s3 + $0x18] sm:$0xff]  ;;  %v125_v15 = vld [vmem:[%s715_s3 + $0x20] sm:$0xff]  ;;  %v210_v17 = vld [vmem:[%s717_s5 + $0x8] sm:$0xff]  ;;  %vm224_vm3 = vcmask 523264   ;;  %s554_s13 = smov [#allocation2]  }
   0x5   :  { %496 = vmatprep.subr.bf16.mxu0 %v551_v3  ;;  %501 = vmatpush3.bf16.msra.mxu1 %v500_v10  ;;  %v503_v14 = vpack.c.bf16 %v124_v13, %v123_v12  ;;  %v209_v16 = vld [vmem:[%s717_s5] sm:$0xff]  ;;  %v211_v18 = vld [vmem:[%s717_s5 + $0x10] sm:$0xff]  ;;  %v212_v20 = vld [vmem:[%s717_s5 + $0x18] sm:$0xff]  ;;  %s392_s3 = sshll.u32 %s554_s13, 4  ;;  %s393_s3 = int_to_ptr.vmem [resolvable:$true] %s392_s3 }
   0x6   :  { %502 = vmatprep.subr.bf16.mxu1 %v551_v3  ;;  %v506_v19 = vpack.c.bf16 %v210_v17, %v209_v16  ;;  %v509_v21 = vpack.c.bf16 %v212_v20, %v211_v18  ;;  %v213_v22 = vld [vmem:[%s717_s5 + $0x20] sm:$0xff]  ;;  %v214_v23 = vld [vmem:[%s717_s5 + $0x28] sm:$0xff]  ;;  %v215_v30 = vld [vmem:[%s717_s5 + $0x30] sm:$0xff]  ;;  %p532_p1 = scmp.lt.s32.totalorder %s393_s3, %s393_s3 }
   0x7   :  { %v512_v24 = vpack.c.bf16 %v214_v23, %v213_v22  ;;  %v400_v25 = vld [vmem:[%s714_s2] ss:$0 sm:$0xff]  ;;  %v216_v31 = vld [vmem:[%s717_s5 + $0x38] sm:$0xff]  ;;  %v301_v34 = vld [vmem:[%s719_s7 + $0x8] sm:$0xff] }
   0x8   :  { %498 = vmatpush3.bf16.msra.mxu0 %v497_v9  ;;  %v515_v32 = vpack.c.bf16 %v216_v31, %v215_v30  ;;  %v300_v33 = vld [vmem:[%s719_s7] sm:$0xff]  ;;  %v302_v41 = vld [vmem:[%s719_s7 + $0x10] sm:$0xff]  ;;  %v303_v42 = vld [vmem:[%s719_s7 + $0x18] sm:$0xff] }
   0x9   :  { %505 = vmatprep.subr.bf16.mxu0 %v551_v3  ;;  %504 = vmatpush3.bf16.msra.mxu1 %v503_v14  ;;  %v518_v35 = vpack.c.bf16 %v301_v34, %v300_v33  ;;  %v403_v36 = vld [vmem:[%s716_s4] ss:$0 sm:$0xff]  ;;  %v521_v43 = vpack.c.bf16 %v303_v42, %v302_v41 }
   0xa   :  { %456 = vmatprep.subr.mxu1 %v553_v6  ;;  %v304_v44 = vld [vmem:[%s719_s7 + $0x20] sm:$0xff]  ;;  %s527_s7 = scalar_lea.vmem %s393_s3, 128 }
   0xb   :  { %446 = vmatmul.mubr.msk.f32.vlgmr.msra.gmra.mrb[0].mxu0 %vm45_vm1, %v33_v11  ;;  %v406_v45 = vld [vmem:[%s718_s6] ss:$0 sm:$0xff]  ;;  %p528_p0 = scmp.ne.s32.totalorder %s393_s3, %s527_s7  ;;  %p533_p2 = scmp.lt.s32.totalorder %s527_s7, %s527_s7 }
   0xc   :  { %477 = vmatprep.mubr.msk.f32.mxu0 %vm552_vm0, %v553_v6  ;;  %507 = vmatpush3.bf16.msra.mxu0 %v506_v19  ;;  %v409_v50 = vld [vmem:[%s720_s8] ss:$0 sm:$0xff] }
   0xd   :  { %457 = vmatpush3.msra.mxu1 %v125_v15  ;;  %508 = vmatprep.subr.bf16.mxu0 %v551_v3  ;;  %p534_p3 = por %p533_p2, %p532_p1 }
   0xe   :  { %517 = vmatprep.subr.bf16.mxu1 %v551_v3 }
   0xf   :  { %p535_p4 = pnand %p534_p3, %p528_p0 }
  0x10   :  { %510 = vmatpush3.bf16.msra.mxu0 %v509_v21 }
  0x11   :  { %511 = vmatprep.subr.bf16.mxu0 %v551_v3 }
  0x14   :  { %513 = vmatpush3.bf16.msra.mxu0 %v512_v24 }
  0x15   :  { %514 = vmatprep.subr.bf16.mxu0 %v551_v3 }
  0x18   :  { %516 = vmatpush3.bf16.msra.mxu0 %v515_v32 }
  0xde   :  { %v115_v26 = vpop.f32.mrb[0].mxu0 }
  0xdf   :  { %v116_v27 = vadd.f32 %v400_v25, %v115_v26  ;;  %v447_v28 = vpop.f32.mrb[1].mxu0 }
  0xe1   :  { %v402_v29 = vclamps-f32 %v116_v27, 1.0 }
  0xe3   :  { %459 = vmatmul.mubr.msk.f32.vlgmr.msra.gmra.mrb[0].mxu1 %vm133_vm2, %v402_v29 }
  0xe4   :  { %490 = vmatprep.mubr.msk.f32.mxu1 %vm552_vm0, %v553_v6  ;;  %519 = vmatpush3.bf16.msra.mxu1 %v518_v35 }
  0xe5   :  { %520 = vmatprep.subr.bf16.mxu1 %v551_v3 }
  0xe8   :  { %522 = vmatpush3.bf16.msra.mxu1 %v521_v43 }
  0xe9   :  { %488 = vmatprep.subr.mxu1 %v553_v6 }
  0xec   :  { %489 = vmatpush3.msra.mxu1 %v304_v44 }
 0x1b6   :  { %v203_v37 = vpop.f32.mrb[0].mxu1 }
 0x1b7   :  { %v204_v38 = vadd.f32 %v403_v36, %v203_v37  ;;  %v460_v39 = vpop.f32.mrb[1].mxu1 }
 0x1b9   :  { %v405_v40 = vclamps-f32 %v204_v38, 1.0 }
 0x1bb   :  { %478 = vmatmul.mubr.msk.f32.vlgmr.msra.gmra.mrb[2].mxu0 %vm224_vm3, %v405_v40 }
 0x28e   :  { %v294_v46 = vpop.f32.mrb[2].mxu0 }
 0x28f   :  { %v295_v47 = vadd.f32 %v406_v45, %v294_v46  ;;  %v479_v48 = vpop.f32.mrb[3].mxu0 }
 0x291   :  { %v408_v49 = vclamps-f32 %v295_v47, 1.0 }
 0x293   :  { %491 = vmatmul.mubr.msk.f32.vlgmr.msra.gmra.mrb[2].mxu1 %vm133_vm2, %v408_v49 }
 0x366   :  { %v381_v51 = vpop.f32.mrb[2].mxu1 }
 0x367   :  { %v382_v52 = vadd.f32 %v409_v50, %v381_v51  ;;  %v492_v53 = vpop.f32.mrb[3].mxu1 }
 0x369   :  { %385 = vst.msk [vmem:[#allocation2] sm:$0xff] %vm45_vm1, %v382_v52 }
 0x36a   :  { %538 = shalt.err (!%p535_p4)
}
 0x36b   :  { %s539_s15 = scalar_lea.hbm %s721_s9, 128 }
 0x36c   :  { %p540_p5 = scmp.ne.s32.totalorder %s721_s9, %s539_s15  ;;  %p543_p6 = scmp.lt.u32.totalorder %s539_s15, %s721_s9 }
 0x36e   :  { %p545_p7 = pnand %p543_p6, %p540_p5 }
 0x370   :  { %548 = shalt.err (!%p545_p7)
}
 0x371   :  { %395 = dma.vmem_to_hbm [thread:$0]  %s393_s3, 128, %s721_s9, [#allocation3]  }
 0x372   :  { %549 = dma.done.wait [#allocation3], 128  }
 0x373   :  { %550 = vsyncadd [#allocation3], 4294967168 }
 0x374   :  { %399 = vsyncpa [#allocation3], 1 }

</bundles_post_ra>
